<compile_context>
chip_gen: v6e
topology: v6e:2x2x1
jax: 0.10.0
libtpu: 0.0.40
codegen_flags: <defaults>
</compile_context>

<pallas_src>
import functools
import math

import jax
import jax.numpy as jnp
from jax import lax
from jax.experimental import pallas as pl
from jax.experimental.pallas import tpu as pltpu


# ----------------------------------------------------------------------------
# Pallas kernels
# ----------------------------------------------------------------------------

def _conv_linear_kernel(x_ref, w_ref, b_ref, o_ref, *, negative_slope):
    """im2col'd Conv1d (kernel=3, stride=2, pad=1) as matmul + bias + LeakyReLU."""
    y = jnp.dot(x_ref[0], w_ref[...], preferred_element_type=jnp.float32)
    y = y + b_ref[...]
    y = jnp.where(y >= 0.0, y, negative_slope * y)
    o_ref[...] = y[None].astype(o_ref.dtype)


def _encoder_stack_kernel(x_ref, ln_a_ref, wqkv_ref, wo_ref, ln_f_ref,
                          w1_ref, b1_ref, w2_ref, b2_ref,
                          gen_ln_ref, gen_w_ref, gen_b_ref,
                          o_ref, z_sc,
                          *, n_heads, head_dim, eps, negative_slope):
    """One grid step = one (batch, layer) pair.

    Residual stream is carried across the layer axis in VMEM scratch `z_sc`.
    The generator runs only at the last layer and writes the sole output.
    """
    layer = pl.program_id(1)
    hidden = n_heads * head_dim

    @pl.when(layer == 0)
    def _():
        z_sc[...] = x_ref[0].astype(jnp.float32)

    x = z_sc[...]                                               # (seq, H)

    # ---- attention sub-layer ------------------------------------------------
    ln_a = ln_a_ref[0]                                          # (2, H)
    mu = jnp.mean(x, axis=-1, keepdims=True)
    var = jnp.mean(jnp.square(x - mu), axis=-1, keepdims=True)
    xn = (x - mu) * lax.rsqrt(var + eps)
    xn = xn * ln_a[0:1, :] + ln_a[1:2, :]                       # (seq, H)

    # One fused QKV projection; 1/sqrt(dk) is pre-folded into the Q slice.
    qkv = jnp.dot(xn, wqkv_ref[0], preferred_element_type=jnp.float32)
    qh_all = qkv[:, :hidden]
    kh_all = qkv[:, hidden:2 * hidden]
    vh_all = qkv[:, 2 * hidden:]

    ctx = []
    for h in range(n_heads):                                    # static unroll
        lo, hi = h * head_dim, (h + 1) * head_dim
        qh = qh_all[:, lo:hi]
        kh = kh_all[:, lo:hi]
        vh = vh_all[:, lo:hi]
        # Contract last dims of both operands -> no kh.T transpose / relayout.
        s = lax.dot_general(qh, kh, (((1,), (1,)), ((), ())),
                            preferred_element_type=jnp.float32)  # (seq, seq)
        s = s - jnp.max(s, axis=-1, keepdims=True)
        p = jnp.exp(s)
        denom = jnp.sum(p, axis=-1, keepdims=True)
        w = p * pl.reciprocal(denom, approx=True)                # EUP, not VPU
        ctx.append(jnp.dot(w, vh, preferred_element_type=jnp.float32))

    # Single full-K output projection over the concatenated per-head context.
    c = jnp.concatenate(ctx, axis=-1)                            # (seq, H)
    attn = jnp.dot(c, wo_ref[0], preferred_element_type=jnp.float32)
    # Residual is against the *normed* x, exactly as the PyTorch EncoderBlock.
    z = xn + attn

    # ---- feed-forward sub-layer ---------------------------------------------
    ln_f = ln_f_ref[0]
    mu2 = jnp.mean(z, axis=-1, keepdims=True)
    var2 = jnp.mean(jnp.square(z - mu2), axis=-1, keepdims=True)
    hn = (z - mu2) * lax.rsqrt(var2 + eps)
    hn = hn * ln_f[0:1, :] + ln_f[1:2, :]

    a = jnp.dot(hn, w1_ref[0], preferred_element_type=jnp.float32) + b1_ref[0]
    if negative_slope == 0.0:
        a = jnp.maximum(a, 0.0)
    else:
        a = jnp.where(a >= 0.0, a, negative_slope * a)
    y = jnp.dot(a, w2_ref[0], preferred_element_type=jnp.float32) + b2_ref[0]
    z_new = z + y
    z_sc[...] = z_new

    # ---- generator (only at the last layer) ---------------------------------
    @pl.when(layer == pl.num_programs(1) - 1)
    def _():
        gen_ln = gen_ln_ref[...]                                 # (2, H)
        mu3 = jnp.mean(z_new, axis=-1, keepdims=True)
        var3 = jnp.mean(jnp.square(z_new - mu3), axis=-1, keepdims=True)
        hg = (z_new - mu3) * lax.rsqrt(var3 + eps)
        hg = hg * gen_ln[0:1, :] + gen_ln[1:2, :]
        logits = jnp.dot(hg, gen_w_ref[...],
                         preferred_element_type=jnp.float32) + gen_b_ref[...]
        m = jnp.max(logits, axis=-1, keepdims=True)
        lse = jnp.log(jnp.sum(jnp.exp(logits - m), axis=-1, keepdims=True)) + m
        o_ref[...] = (logits - lse)[None].astype(o_ref.dtype)


# ----------------------------------------------------------------------------
# JAX glue (pallas_call wrappers)
# ----------------------------------------------------------------------------

_PP1 = pltpu.CompilerParams(dimension_semantics=("parallel",))


def _conv1d_block(x, w, b, *, negative_slope=0.01):
    """Conv1d(kernel=3, stride=2, pad=1) + LeakyReLU on [bs, L, H] (channels last)."""
    bs, L, H = x.shape
    out_L = (L - 1) // 2 + 1
    xp = jnp.pad(x, ((0, 0), (1, 1), (0, 0)))
    idx = 2 * jnp.arange(out_L)
    cols = jnp.stack([xp[:, idx + k, :] for k in range(3)], axis=2)   # (bs,oL,3,H)
    cols = cols.reshape(bs, out_L, 3 * H)
    # Flatten torch weight (c_out, c_in, k) so that col index k*H + c_in matches.
    w_flat = w.transpose(2, 1, 0).reshape(3 * H, H)
    b2 = b.reshape(1, H)

    kernel = functools.partial(_conv_linear_kernel, negative_slope=negative_slope)
    return pl.pallas_call(
        kernel,
        out_shape=jax.ShapeDtypeStruct((bs, out_L, H), x.dtype),
        grid=(bs,),
        in_specs=[
            pl.BlockSpec((1, out_L, 3 * H), lambda i: (i, 0, 0)),
            pl.BlockSpec((3 * H, H), lambda i: (0, 0)),
            pl.BlockSpec((1, H), lambda i: (0, 0)),
        ],
        out_specs=pl.BlockSpec((1, out_L, H), lambda i: (i, 0, 0)),
        compiler_params=_PP1,
    )(cols, w_flat, b2)


def _stack_layer_params(layers, n_splits):
    """Stack per-layer torch weights on a leading layer axis (done once, host side)."""
    H = layers[0]['wq'].shape[0]
    hd = H // n_splits
    scale = 1.0 / math.sqrt(hd)
    ln_a = jnp.stack([jnp.stack([lp['attn_ln_g'], lp['attn_ln_b']]) for lp in layers])
    wqkv = jnp.stack([jnp.concatenate(
        [lp['wq'].T * scale, lp['wk'].T, lp['wv'].T], axis=1) for lp in layers])
    wo = jnp.stack([lp['wo'].T for lp in layers])
    ln_f = jnp.stack([jnp.stack([lp['fc_ln_g'], lp['fc_ln_b']]) for lp in layers])
    w1 = jnp.stack([lp['fc_w1'].T for lp in layers])
    b1 = jnp.stack([lp['fc_b1'].reshape(1, -1) for lp in layers])
    w2 = jnp.stack([lp['fc_w2'].T for lp in layers])
    b2 = jnp.stack([lp['fc_b2'].reshape(1, -1) for lp in layers])
    return ln_a, wqkv, wo, ln_f, w1, b1, w2, b2


def _encoder_stack_and_generator(z, params, n_splits, *, use_leaky_relu=False,
                                 eps=1e-5):
    bs, seq, H = z.shape
    hd = H // n_splits
    n_layers = len(params['layers'])
    last = params['gen_w'].shape[0]
    ns = 0.01 if use_leaky_relu else 0.0

    ln_a, wqkv, wo, ln_f, w1, b1, w2, b2 = _stack_layer_params(
        params['layers'], n_splits)
    gen_ln = jnp.stack([params['gen_ln_g'], params['gen_ln_b']])     # (2, H)
    gen_w = params['gen_w'].T                                        # (H, last)
    gen_b = params['gen_b'].reshape(1, last)

    kernel = functools.partial(_encoder_stack_kernel, n_heads=n_splits,
                               head_dim=hd, eps=eps, negative_slope=ns)

    # Per-layer weights are streamed along the (inner, "arbitrary") layer axis;
    # the residual stream stays resident in VMEM scratch; only the final
    # log-probs hit HBM.
    # TODO(synk): for very large hidden sizes raise vmem_limit_bytes (double-
    # buffered per-layer weights must fit the scoped VMEM limit).
    return pl.pallas_call(
        kernel,
        out_shape=jax.ShapeDtypeStruct((bs, seq, last), z.dtype),
        grid=(bs, n_layers),
        in_specs=[
            pl.BlockSpec((1, seq, H), lambda b, l: (b, 0, 0)),        # x
            pl.BlockSpec((1, 2, H), lambda b, l: (l, 0, 0)),          # attn LN
            pl.BlockSpec((1, H, 3 * H), lambda b, l: (l, 0, 0)),      # fused QKV
            pl.BlockSpec((1, H, H), lambda b, l: (l, 0, 0)),          # out proj
            pl.BlockSpec((1, 2, H), lambda b, l: (l, 0, 0)),          # fc LN
            pl.BlockSpec((1, H, 4 * H), lambda b, l: (l, 0, 0)),      # fc W1
            pl.BlockSpec((1, 1, 4 * H), lambda b, l: (l, 0, 0)),      # fc b1
            pl.BlockSpec((1, 4 * H, H), lambda b, l: (l, 0, 0)),      # fc W2
            pl.BlockSpec((1, 1, H), lambda b, l: (l, 0, 0)),          # fc b2
            pl.BlockSpec((2, H), lambda b, l: (0, 0)),                # gen LN
            pl.BlockSpec((H, last), lambda b, l: (0, 0)),             # gen W
            pl.BlockSpec((1, last), lambda b, l: (0, 0)),             # gen b
        ],
        out_specs=pl.BlockSpec((1, seq, last), lambda b, l: (b, 0, 0)),
        scratch_shapes=[pltpu.VMEM((seq, H), jnp.float32)],
        compiler_params=pltpu.CompilerParams(
            dimension_semantics=("parallel", "arbitrary")),
    )(z, ln_a, wqkv, wo, ln_f, w1, b1, w2, b2, gen_ln, gen_w, gen_b)


def transformer_forward(x, params, n_splits, use_leaky_relu=False):
    """x: [bs, frames, hidden] -> log-probs [bs, frames//4, last_size]."""
    # FrameEmbedding: two stride-2 Conv1d + LeakyReLU.
    z = _conv1d_block(x, params['conv1_w'], params['conv1_b'])
    z = _conv1d_block(z, params['conv2_w'], params['conv2_b'])
    # TODO(synk): Dropout layers are identity (inference / eval mode); mask is
    # None in Transformer.forward; the positional-encoding helper is never
    # called by forward, so it is intentionally not applied here.
    # Whole encoder stack + generator in ONE pallas_call (residual carried in
    # VMEM across the layer grid axis; per-layer weights streamed by BlockSpec).
    return _encoder_stack_and_generator(z, params, n_splits,
                                        use_leaky_relu=use_leaky_relu)


# ----------------------------------------------------------------------------
# Pure-JAX reference (mirror of the PyTorch forward, eval mode) for validation
# ----------------------------------------------------------------------------

def _layernorm_ref(x, g, b, eps=1e-5):
    mu = jnp.mean(x, axis=-1, keepdims=True)
    var = jnp.mean(jnp.square(x - mu), axis=-1, keepdims=True)
    return (x - mu) / jnp.sqrt(var + eps) * g + b


def _multihead_ref(q, k, v, wq, wk, wv, wo, n_splits):
    hd = q.shape[-1] // n_splits

    def proj_split_cat(x, w):
        y = x @ w.T
        return jnp.concatenate(jnp.split(y, n_splits, axis=-1), axis=0)

    qw = proj_split_cat(q, wq)
    kw = proj_split_cat(k, wk)
    vw = proj_split_cat(v, wv)
    s = jnp.einsum('bqd,bkd->bqk', qw, kw) / math.sqrt(hd)
    w_attn = jax.nn.softmax(s, axis=-1)
    c = jnp.einsum('bqk,bkd->bqd', w_attn, vw)
    c = jnp.concatenate(jnp.split(c, n_splits, axis=0), axis=-1)
    return c @ wo.T


def _conv1d_ref(x, w, b):
    bs, L, H = x.shape
    out_L = (L - 1) // 2 + 1
    xp = jnp.pad(x, ((0, 0), (1, 1), (0, 0)))
    ys = []
    for t in range(out_L):
        window = xp[:, 2 * t:2 * t + 3, :]                      # (bs, 3, H_in)
        ys.append(jnp.einsum('bki,oik->bo', window, w) + b)
    return jnp.stack(ys, axis=1)


def _reference_forward(x, params, n_splits, use_leaky_relu=False):
    def lrelu(a):
        return jnp.where(a >= 0, a, 0.01 * a)
    act = lrelu if use_leaky_relu else (lambda a: jnp.maximum(a, 0.0))

    z = lrelu(_conv1d_ref(x, params['conv1_w'], params['conv1_b']))
    z = lrelu(_conv1d_ref(z, params['conv2_w'], params['conv2_b']))
    for lp in params['layers']:
        xn = _layernorm_ref(z, lp['attn_ln_g'], lp['attn_ln_b'])
        mh = _multihead_ref(xn, xn, xn, lp['wq'], lp['wk'], lp['wv'], lp['wo'],
                            n_splits)
        zz = xn + mh
        h = _layernorm_ref(zz, lp['fc_ln_g'], lp['fc_ln_b'])
        y = act(h @ lp['fc_w1'].T + lp['fc_b1']) @ lp['fc_w2'].T + lp['fc_b2']
        z = zz + y
    h = _layernorm_ref(z, params['gen_ln_g'], params['gen_ln_b'])
    logits = h @ params['gen_w'].T + params['gen_b']
    return jax.nn.log_softmax(logits, axis=-1)


# ----------------------------------------------------------------------------
# Test
# ----------------------------------------------------------------------------

if __name__ == "__main__":
    bs, frames, hidden, n_splits, last_size, n_layers = 2, 32, 32, 4, 16, 2

    key = jax.random.PRNGKey(0)
    keys = iter(jax.random.split(key, 64))

    def uniform(k, shape, bound):
        return jax.random.uniform(k, shape, jnp.float32, -bound, bound)

    lin_b = 1.0 / math.sqrt(hidden)
    ff_b = 1.0 / math.sqrt(4 * hidden)
    conv_b = 1.0 / math.sqrt(3 * hidden)

    params = {
        'conv1_w': uniform(next(keys), (hidden, hidden, 3), conv_b),
        'conv1_b': uniform(next(keys), (hidden,), conv_b),
        'conv2_w': uniform(next(keys), (hidden, hidden, 3), conv_b),
        'conv2_b': uniform(next(keys), (hidden,), conv_b),
        'gen_ln_g': 1.0 + 0.1 * jax.random.normal(next(keys), (hidden,), jnp.float32),
        'gen_ln_b': 0.1 * jax.random.normal(next(keys), (hidden,), jnp.float32),
        'gen_w': uniform(next(keys), (last_size, hidden), lin_b),
        'gen_b': uniform(next(keys), (last_size,), lin_b),
        'layers': [],
    }
    for _ in range(n_layers):
        params['layers'].append({
            'attn_ln_g': 1.0 + 0.1 * jax.random.normal(next(keys), (hidden,), jnp.float32),
            'attn_ln_b': 0.1 * jax.random.normal(next(keys), (hidden,), jnp.float32),
            'wq': uniform(next(keys), (hidden, hidden), lin_b),
            'wk': uniform(next(keys), (hidden, hidden), lin_b),
            'wv': uniform(next(keys), (hidden, hidden), lin_b),
            'wo': uniform(next(keys), (hidden, hidden), lin_b),
            'fc_ln_g': 1.0 + 0.1 * jax.random.normal(next(keys), (hidden,), jnp.float32),
            'fc_ln_b': 0.1 * jax.random.normal(next(keys), (hidden,), jnp.float32),
            'fc_w1': uniform(next(keys), (4 * hidden, hidden), lin_b),
            'fc_b1': uniform(next(keys), (4 * hidden,), lin_b),
            'fc_w2': uniform(next(keys), (hidden, 4 * hidden), ff_b),
            'fc_b2': uniform(next(keys), (hidden,), ff_b),
        })

    x = jax.random.normal(next(keys), (bs, frames, hidden), jnp.float32)

    out = transformer_forward(x, params, n_splits)
    out = jax.block_until_ready(out)

    ref = _reference_forward(x, params, n_splits)
    assert out.shape == (bs, frames // 4, last_size)
    max_err = float(jnp.max(jnp.abs(out - ref)))
    # approx=True softmax reciprocal slightly loosens exact agreement.
    assert jnp.allclose(out, ref, atol=2e-2, rtol=2e-2), (
        f"mismatch vs JAX reference, max abs err = {max_err}")

    print("KERNEL_OK")
</pallas_src>

<mosaic_0001>
module attributes {stable_mosaic.version = 11 : i64} {
  func.func @_conv_linear_kernel(%arg0: i32, %arg1: memref<1x16x96xf32, #tpu.memory_space<vmem>>, %arg2: memref<96x32xf32, #tpu.memory_space<vmem>>, %arg3: memref<1x32xf32, #tpu.memory_space<vmem>>, %arg4: memref<1x16x32xf32, #tpu.memory_space<vmem>>) attributes {dimension_semantics = [#tpu.dimension_semantics<parallel>], iteration_bounds = array<i64: 2>, scalar_prefetch = 0 : i64, scratch_operands = 0 : i64, tpu.core_type = #tpu.core_type<tc>, window_params = [{transform_indices = @transform_0, window_bounds = array<i64: 1, 16, 96>}, {pipeline_mode = #tpu.pipeline_mode<synchronous>, transform_indices = @transform_1, window_bounds = array<i64: 96, 32>}, {pipeline_mode = #tpu.pipeline_mode<synchronous>, transform_indices = @transform_2, window_bounds = array<i64: 1, 32>}, {transform_indices = @transform_3, window_bounds = array<i64: 1, 16, 32>}]} {
    %c0 = arith.constant 0 : index
    %c0_0 = arith.constant 0 : index
    %c0_1 = arith.constant 0 : index
    %0 = vector.load %arg1[%c0, %c0_0, %c0_1] : memref<1x16x96xf32, #tpu.memory_space<vmem>>, vector<1x16x96xf32>
    %1 = vector.shape_cast %0 : vector<1x16x96xf32> to vector<16x96xf32>
    %c0_2 = arith.constant 0 : index
    %c0_3 = arith.constant 0 : index
    %2 = vector.load %arg2[%c0_2, %c0_3] : memref<96x32xf32, #tpu.memory_space<vmem>>, vector<96x32xf32>
    %cst = arith.constant dense<0.000000e+00> : vector<16x32xf32>
    %3 = tpu.matmul %1, %2, %cst {dimension_numbers = #tpu.dot_dimension_numbers<[1], [0], [0], [1], [0, 0, 1, 1], [], []>} : vector<16x96xf32>, vector<96x32xf32>, vector<16x32xf32> -> vector<16x32xf32>
    %c0_4 = arith.constant 0 : index
    %c0_5 = arith.constant 0 : index
    %4 = vector.load %arg3[%c0_4, %c0_5] : memref<1x32xf32, #tpu.memory_space<vmem>>, vector<1x32xf32>
    %5 = vector.broadcast %4 : vector<1x32xf32> to vector<16x32xf32>
    %6 = arith.addf %3, %5 : vector<16x32xf32>
    %cst_6 = arith.constant 0.000000e+00 : f32
    %7 = vector.broadcast %cst_6 : f32 to vector<16x32xf32>
    %8 = arith.cmpf oge, %6, %7 : vector<16x32xf32>
    %cst_7 = arith.constant 0.00999999977 : f32
    %9 = vector.broadcast %cst_7 : f32 to vector<16x32xf32>
    %10 = arith.mulf %9, %6 : vector<16x32xf32>
    %11 = arith.select %8, %6, %10 : vector<16x32xi1>, vector<16x32xf32>
    %12 = vector.shape_cast %11 : vector<16x32xf32> to vector<1x16x32xf32>
    %c0_8 = arith.constant 0 : index
    %c0_9 = arith.constant 0 : index
    %c0_10 = arith.constant 0 : index
    %13 = vector.load %arg4[%c0_8, %c0_9, %c0_10] : memref<1x16x32xf32, #tpu.memory_space<vmem>>, vector<1x16x32xf32>
    tpu.vector_store %arg4[%c0_8, %c0_9, %c0_10], %12 {strides = array<i32>} : memref<1x16x32xf32, #tpu.memory_space<vmem>>, vector<1x16x32xf32>,
    return
  }
  func.func @transform_0(%arg0: i32) -> (i32, i32, i32) {
    %c0_i32 = arith.constant 0 : i32
    %c0_i32_0 = arith.constant 0 : i32
    %c0_i32_1 = arith.constant 0 : i32
    return %arg0, %c0_i32, %c0_i32_0 : i32, i32, i32
  }
  func.func @transform_1(%arg0: i32) -> (i32, i32) {
    %c0_i32 = arith.constant 0 : i32
    %c0_i32_0 = arith.constant 0 : i32
    %c0_i32_1 = arith.constant 0 : i32
    return %c0_i32, %c0_i32_0 : i32, i32
  }
  func.func @transform_2(%arg0: i32) -> (i32, i32) {
    %c0_i32 = arith.constant 0 : i32
    %c0_i32_0 = arith.constant 0 : i32
    %c0_i32_1 = arith.constant 0 : i32
    return %c0_i32, %c0_i32_0 : i32, i32
  }
  func.func @transform_3(%arg0: i32) -> (i32, i32, i32) {
    %c0_i32 = arith.constant 0 : i32
    %c0_i32_0 = arith.constant 0 : i32
    %c0_i32_1 = arith.constant 0 : i32
    return %arg0, %c0_i32, %c0_i32_0 : i32, i32, i32
  }
}

</mosaic_0001>

<bundles_post_ra>
// kernel: tpu_custom_call.1
= control target key start
LH: loop header
LB: loop body
LE: loop exit
PB: predicated region body
PF: predicated region fallthrough
CT: control target
= control target key end

     0   :  { %8 = vsyncpa [#allocation3], 0  ;;  %s684_s0 = inlined_call_operand.vmem [shape: f32[2,16,96], index: 0, kind: input, shape index: {}]   ;;  %s685_s1 = inlined_call_operand.vmem [shape: f32[96,32], index: 1, kind: input, shape index: {}]   ;;  %s686_s2 = inlined_call_operand.vmem [shape: f32[1,32], index: 2, kind: input, shape index: {}]   ;;  %s687_s3 = inlined_call_operand.hbm [shape: f32[2,16,32], index: 3, kind: output, shape index: {}]  }
   0x1   :  { %10 = vsyncpa [#allocation3 + $0x1], 0  ;;  %s541_s12 = smov 0   ;;  %s543_s13 = smov 0  }
   0x2   :  { %s545_s14 = smov 0   ;;  %s547_s15 = smov 0  }
   0x3 LB: > { %s562_s16 = sadd.s32 4294967295, %s516_s15   ;;  %s357_s17 = sadd.s32 4294967294, %s516_s15   ;;  %s516_s15 = sphi %s547_s15, %s693_s15   ;;  %s512_s14 = sphi %s545_s14, %s692_s14   ;;  %s508_s13 = sphi %s543_s13, %s691_s13   ;;  %s504_s12 = sphi %s541_s12, %s690_s12  }
   0x4   : > { %s566_s18 = sadd.s32 1, %s516_s15   ;;  %s91_s19 = sadd.s32 1, %s512_s14 }
   0x5   : > { %s88_s20 = ssub.s32 %s516_s15, %s566_s18  ;;  %p101_p0 = scmp.ne.s32.totalorder %s512_s14, %s508_s13 }
   0x6   : > { %p89_p1 = scmp.eq.s32.totalorder %s88_s20, 0  ;;  %p102_p2 = scmp.eq.s32.totalorder %s562_s16, 1 }
   0x7   : > { %p107_p3 = scmp.ne.s32.totalorder %s508_s13, %s504_s12  ;;  %p108_p4 = scmp.eq.s32.totalorder %s357_s17, 1 }
   0x8   : > { %s577_s21 = scalar_select %p89_p1, %s512_s14, %s91_s19  }
   0x9   : > { %p579_p5 = por %p102_p2, %p101_p0  ;;  %p583_p6 = por %p108_p4, %p107_p3 }
   0xa   : > { %p360_p7 = scmp.ge.s32.totalorder %s516_s15, 1  ;;  %p140_p8 = scmp.lt.s32.totalorder %s516_s15, 3 }
   0xc   : > { %p141_p9 = pnand %p360_p7, %p140_p8 }
   0xd   : > { %p164_p10 = scmp.lt.s32.totalorder (!%p141_p9), %s562_s16, 1  ;;  %s161_s8 = sand.u32 (!%p141_p9), 1, %s508_s13  }
   0xe   : > { %144 = sbr.rel (%p141_p9) target bundleno = 258 (0x102), region = 32  ;;  %s361_s10 = sshll.u32 (!%p141_p9), %s161_s8, 4 }
   0xf   : > { %s163_s19 = scalar_lea.vmem (!%p141_p9), [#allocation2], %s361_s10  ;;  %s373_s24 = sshll.u32 (!%p141_p9), %s562_s16, 8 }
  0x10   : > { %s295_s20 = sshll.u32 (!%p141_p9), %s163_s19, 4  ;;  %s640_s26 = scalar_lea.hbm (!%p141_p9), %s687_s3, %s373_s24  ;;  %s642_s20 = int_to_ptr.vmem [resolvable:$true] %s295_s20 }
  0x11   : > { %s456_s27 = scalar_lea.vmem (!%p141_p9), %s642_s20, 256  ;;  %s518_s28 = smov (!%p141_p9), [#allocation2]  }
  0x12   : > { %p457_p11 = scmp.ne.s32.totalorder (!%p141_p9), %s642_s20, %s456_s27  ;;  %s460_s29 = sshll.u32 (!%p141_p9), %s518_s28, 4  ;;  %s461_s29 = int_to_ptr.vmem [resolvable:$false] %s460_s29 }
  0x13   : > { %v182_v0 = vld [vmem:[%s685_s1 + $0x58] sm:$0xff]  ;;  %v181_v1 = vld [vmem:[%s685_s1 + $0x50] sm:$0xff]  ;;  %v180_v2 = vld [vmem:[%s685_s1 + $0x48] sm:$0xff]  ;;  %s165_s30 = scalar_select %p164_p10, %s562_s16, 1  ;;  %vm190_vm0 = vcmask 785408   ;;  %vm278_vm2 = vcmask 261120  }
  0x14   : > { %388 = vmatprep.subr.mxu0 %v182_v0  ;;  %v179_v3 = vld [vmem:[%s685_s1 + $0x40] sm:$0xff]  ;;  %v178_v4 = vld [vmem:[%s685_s1 + $0x38] sm:$0xff]  ;;  %v177_v6 = vld [vmem:[%s685_s1 + $0x30] sm:$0xff]  ;;  %s644_s16 = scalar_lea.sflag [#allocation3], %s161_s8  ;;  %p458_p12 = pnand %p457_p11, %p579_p5 }
  0x15   : > { %389 = vmatpush3.msra.mxu0 %v182_v0  ;;  %s372_s6 = sshll.u32 %s165_s30, 4  ;;  %v176_v7 = vld [vmem:[%s685_s1 + $0x28] sm:$0xff]  ;;  %v175_v8 = vld [vmem:[%s685_s1 + $0x20] sm:$0xff]  ;;  %v174_v9 = vld [vmem:[%s685_s1 + $0x18] sm:$0xff]  ;;  %s462_s30 = scalar_lea.vmem %s461_s29, 512 }
  0x16   : > { %390 = vmatprep.subr.mxu0 %v181_v1  ;;  %s168_s9 = scalar_lea.vmem %s684_s0, %s372_s6  ;;  %v173_v10 = vld [vmem:[%s685_s1 + $0x10] sm:$0xff]  ;;  %v172_v11 = vld [vmem:[%s685_s1 + $0x8] sm:$0xff]  ;;  %v171_v12 = vld [vmem:[%s685_s1] sm:$0xff]  ;;  %p459_p13 = pneg %p458_p12 }
  0x17   : > { %391 = vmatpush3.msra.mxu0 %v181_v1  ;;  %v169_v5 = vld [vmem:[%s168_s9] sm:$0xff]  ;;  %v170_v13 = vld [vmem:[%s168_s9 + $0x8] sm:$0xff]  ;;  %p463_p0 = scmp.lt.s32.totalorder %s642_s20, %s461_s29  ;;  %p464_p1 = scmp.lt.s32.totalorder %s462_s30, %s456_s27 }
  0x18   : > { %392 = vmatprep.subr.mxu0 %v180_v2  ;;  %412 = vmatprep.mubr.msk.f32.mxu0 %vm190_vm0, %v169_v5  ;;  %v364_v14 = vld [vmem:[%s686_s2] ss:$0 sm:$0xff] }
  0x19   : > { %393 = vmatpush3.msra.mxu0 %v180_v2  ;;  %p465_p2 = por %p464_p1, %p463_p0 }
  0x1a   : > { %394 = vmatprep.subr.mxu0 %v179_v3 }
  0x1b   : > { %395 = vmatpush3.msra.mxu0 %v179_v3  ;;  %p466_p3 = pnand %p465_p2, %p459_p13 }
  0x1c   : > { %396 = vmatprep.subr.mxu0 %v178_v4 }
  0x1d   : > { %397 = vmatpush3.msra.mxu0 %v178_v4 }
  0x1e   : > { %398 = vmatprep.subr.mxu0 %v177_v6 }
  0x1f   : > { %399 = vmatpush3.msra.mxu0 %v177_v6 }
  0x20   : > { %400 = vmatprep.subr.mxu0 %v176_v7 }
  0x21   : > { %401 = vmatpush3.msra.mxu0 %v176_v7 }
  0x22   : > { %402 = vmatprep.subr.mxu0 %v175_v8 }
  0x23   : > { %403 = vmatpush3.msra.mxu0 %v175_v8 }
  0x24   : > { %404 = vmatprep.subr.mxu0 %v174_v9 }
  0x25   : > { %405 = vmatpush3.msra.mxu0 %v174_v9 }
  0x26   : > { %406 = vmatprep.subr.mxu0 %v173_v10 }
  0x27   : > { %407 = vmatpush3.msra.mxu0 %v173_v10 }
  0x28   : > { %408 = vmatprep.subr.mxu0 %v172_v11 }
  0x29   : > { %409 = vmatpush3.msra.mxu0 %v172_v11 }
  0x2a   : > { %410 = vmatprep.subr.mxu0 %v171_v12 }
  0x2b   : > { %411 = vmatpush3.msra.mxu0 %v171_v12 }
  0x2c   : > { %413 = vmatmul.mubr.msk.f32.vlgmr.msra.gmra.mxu0 %vm190_vm0, %v170_v13 }
  0xec   : > { %v414_v15 = vpop.f32.mrf.mxu0 }
  0xed   : > { %v269_v16 = vadd.f32 %v414_v15, %v364_v14 }
  0xee   : > { %v263_v17 = vpop.f32.mrf.mxu0 }
  0xef   : > { %vm273_vm1 = vcmp.ge.f32.partialorder %v269_v16, 0.0  ;;  %v275_v18 = vmul.f32 0.01, %v269_v16  ;;  %v264_v19 = vadd.f32 %v364_v14, %v263_v17 }
  0xf1   : > { %v277_v20 = vsel %vm273_vm1, %v269_v16, %v275_v18  ;;  %vm272_vm3 = vcmp.ge.f32.partialorder %v264_v19, 0.0  ;;  %v274_v21 = vmul.f32 0.01, %v264_v19 }
  0xf2   : > { %280 = vst.msk [vmem:[%s163_s19 + $0x8] sm:$0xff] %vm278_vm2, %v277_v20 }
  0xf3   : > { %v276_v22 = vsel %vm272_vm3, %v264_v19, %v274_v21 }
  0xf4   : > { %279 = vst.msk [vmem:[%s163_s19] sm:$0xff] %vm278_vm2, %v276_v22 }
  0xf5   : > { %469 = shalt.err (!%p466_p3)
}
  0xf6   : > { %s470_s4 = scalar_lea.hbm %s640_s26, 256  ;;  %s474_s7 = scalar_lea.hbm %s687_s3, 512 }
  0xf7   : > { %p471_p4 = scmp.ne.s32.totalorder %s640_s26, %s470_s4  ;;  %p475_p9 = scmp.lt.s32.totalorder %s640_s26, %s687_s3 }
  0xf8   : > { %p476_p10 = scmp.lt.s32.totalorder %s474_s7, %s470_s4 }
  0xf9   : > { %p472_p7 = pnand %p471_p4, %p579_p5 }
  0xfa   : > { %p477_p11 = por %p476_p10, %p475_p9 }
  0xfb   : > { %p473_p8 = pneg %p472_p7 }
  0xfd   : > { %p478_p12 = pnand %p477_p11, %p473_p8 }
  0xff   : > { %481 = shalt.err (!%p478_p12)
}
 0x100   : > { %s519_s11 = smov 128   ;;  %s520_s17 = smov 8  }
 0x101   : > { %415 = dma.vmem_to_hbm [thread:$0]  (%p579_p5), %s642_s20, 256, %s640_s26, %s644_s16, %s519_s11, %s519_s11, %s520_s17  }
 0x102 PF: > { %p421_p13 = scmp.ge.s32.totalorder %s516_s15, 2  ;;  %s310_s19 = sand.u32 1, %s504_s12  }
 0x103   : > { %s311_s24 = scalar_lea.sflag [#allocation3], %s310_s19 }
 0x104   : > { %p418_p0 = pnand %p421_p13, %p583_p6 }
 0x106   : > { %p419_p1 = pneg %p418_p0 }
 0x108   : > { %499 = dma.done.wait (%p419_p1), %s311_s24, 256  }
 0x109   : > { %501 = vsyncadd (%p419_p1), %s311_s24, 4294967040  ;;  %p13_p2 = scmp.ge.s32.totalorder %s566_s18, 4   ;;  %s690_s12 = smov %s508_s13 }
 0x10a   : > { %s691_s13 = smov %s512_s14  ;;  %s692_s14 = smov %s577_s21 }
 0x10b   : > { %s693_s15 = smov %s566_s18  ;;  %15 = sbr.rel (!%p13_p2) target bundleno = 3 (0x3), region = 67 }
 0x110   :  { %316 = vsyncpa [#allocation3], 1 }
 0x111   :  { %318 = vsyncpa [#allocation3 + $0x1], 1 }

</bundles_post_ra>
